<compile_context>
chip_gen: v7x
topology: tpu7x:2x2x1
jax: 0.10.0
libtpu: 0.0.40
codegen_flags: <defaults>
</compile_context>

<pallas_src>
import numpy as np
import jax
import jax.numpy as jnp
from jax.experimental import pallas as pl
from jax.experimental.pallas import tpu as pltpu  # noqa: F401  (TPU backend)

# ----------------------------- synthetic sizes -----------------------------
V = 128                  # vertex count (real SMPL: 6890) -> lane-aligned
NUM_BETAS = 10
NUM_JOINTS = 24
POSE_BASIS = 207         # 23 * 9
NUM_OUT_JOINTS = 43      # 'synthesis' = cocoplus(19) + basic(24)
BATCH = 2
COEFF_K = NUM_BETAS + POSE_BASIS + 1   # 218 = [beta | pose_feature | 1]

# lane layouts for joint-regression outputs
J_STRIDE, J_COLS = 32, 128             # 3 channels * 32 stride, 24 real each
JOUT_PAD = 64                          # per-channel pad for the 43 output joints

assert NUM_JOINTS <= J_STRIDE and 3 * J_STRIDE <= J_COLS
assert NUM_OUT_JOINTS <= JOUT_PAD

PARENTS = np.array(
    [0, 0, 0, 0, 1, 2, 3, 4, 5, 6, 7, 8, 9, 9, 9, 12, 13, 14, 16, 17, 18, 19, 20, 21],
    dtype=np.int32)


# ------------------------------ Pallas kernels ------------------------------
def _blendshape_kernel(coeff_ref, bw_ref, jw_ref, vposed_ref, jpad_ref):
    # coeff_ref: (Npad, 218) bf16   bw_ref: (218, 3V) bf16   jw_ref: (218, 128) bf16
    # vposed_ref: (Npad, 3V) f32    jpad_ref: (Npad, 128) f32
    coeff = coeff_ref[...]
    # v_posed = beta@shapedirs + pose@posedirs + v_template, as ONE MXU dot.
    vposed_ref[...] = jnp.dot(coeff, bw_ref[...],
                              preferred_element_type=jnp.float32)
    # 24 kinematic joints via the folded (coefficient-space) regressor.
    jpad_ref[...] = jnp.dot(coeff, jw_ref[...],
                            preferred_element_type=jnp.float32)


def _skin_kernel(vp_ref, a_ref, wt_ref, jout_ref, verts_ref, joints_ref):
    # vp_ref:   (Npad, 3V)      f32  channel-major v_posed (col = c*V + v)
    # a_ref:    (12*Npad, 24)   bf16 rows = k*Npad + n, k = 4*r + col of T[:3,:4]
    # wt_ref:   (24, V)         bf16 LBS weights^T
    # jout_ref: (V, JOUT_PAD)   bf16 shared per-channel output-joint regressor
    # verts_ref:(Npad, 3V) f32       joints_ref:(Npad, 3*JOUT_PAD) f32
    npad = vp_ref.shape[0]
    # all per-vertex transform rows for the whole (padded) batch: one MXU call
    t = jnp.dot(a_ref[...], wt_ref[...],
                preferred_element_type=jnp.float32)            # (12*Npad, V)
    vpx = vp_ref[:, 0 * V:1 * V]                               # vreg-aligned slices
    vpy = vp_ref[:, 1 * V:2 * V]
    vpz = vp_ref[:, 2 * V:3 * V]
    jout = jout_ref[...]
    for c in range(3):                 # static, 8-sublane-aligned slabs of t
        b = 4 * c
        vc = (t[(b + 0) * npad:(b + 1) * npad, :] * vpx
              + t[(b + 1) * npad:(b + 2) * npad, :] * vpy
              + t[(b + 2) * npad:(b + 3) * npad, :] * vpz
              + t[(b + 3) * npad:(b + 4) * npad, :])           # (Npad, V)
        verts_ref[:, c * V:(c + 1) * V] = vc                   # direct store, no concat
        joints_ref[:, c * JOUT_PAD:(c + 1) * JOUT_PAD] = jnp.dot(
            vc.astype(jnp.bfloat16), jout, preferred_element_type=jnp.float32)


# ------------------------------ JAX glue (tiny) ------------------------------
def quat2mat(quat):
    q = quat / jnp.linalg.norm(quat, axis=1, keepdims=True)
    w, x, y, z = q[:, 0], q[:, 1], q[:, 2], q[:, 3]
    w2, x2, y2, z2 = w * w, x * x, y * y, z * z
    wx, wy, wz = w * x, w * y, w * z
    xy, xz, yz = x * y, x * z, y * z
    rot = jnp.stack([
        w2 + x2 - y2 - z2, 2 * xy - 2 * wz, 2 * wy + 2 * xz,
        2 * wz + 2 * xy, w2 - x2 + y2 - z2, 2 * yz - 2 * wx,
        2 * xz - 2 * wy, 2 * wx + 2 * yz, w2 - x2 - y2 + z2], axis=1)
    return rot.reshape(-1, 3, 3)


def batch_rodrigues(theta):
    angle = jnp.linalg.norm(theta + 1e-8, axis=1, keepdims=True)
    normalized = theta / angle
    half = angle * 0.5
    quat = jnp.concatenate([jnp.cos(half), jnp.sin(half) * normalized], axis=1)
    return quat2mat(quat)


def batch_global_rigid_transformation(Rs, Js, parents, rotate_base=True):
    N = Rs.shape[0]
    if rotate_base:
        rot_x = jnp.array([[1, 0, 0], [0, -1, 0], [0, 0, -1]], dtype=jnp.float32)
        root_rotation = jnp.matmul(Rs[:, 0], rot_x)
    else:
        root_rotation = Rs[:, 0]
    Js = Js[..., None]                                                   # (N,24,3,1)

    def make_A(R, t):
        R_homo = jnp.pad(R, ((0, 0), (0, 1), (0, 0)))                    # (N,4,3)
        t_homo = jnp.concatenate([t, jnp.ones((N, 1, 1), jnp.float32)], axis=1)
        return jnp.concatenate([R_homo, t_homo], axis=2)                 # (N,4,4)

    results = [make_A(root_rotation, Js[:, 0])]
    for i in range(1, parents.shape[0]):
        p = int(parents[i])
        j_here = Js[:, i] - Js[:, p]
        results.append(jnp.matmul(results[p], make_A(Rs[:, i], j_here)))
    results = jnp.stack(results, axis=1)                                 # (N,24,4,4)
    new_J = results[:, :, :3, 3]
    Js_w0 = jnp.concatenate([Js, jnp.zeros((N, NUM_JOINTS, 1, 1), jnp.float32)],
                            axis=2)                                      # (N,24,4,1)
    init_bone = jnp.matmul(results, Js_w0)                               # (N,24,4,1)
    init_bone = jnp.pad(init_bone, ((0, 0), (0, 0), (0, 0), (3, 0)))     # (N,24,4,4)
    A = results - init_bone
    return new_J, A


# --------------------- one-time parameter preprocessing ---------------------
def prepare_smpl_params(params):
    """Hoisted out of the per-call path: reorganize + cast SMPL weights once."""
    f32, bf16 = jnp.float32, jnp.bfloat16
    # channel-major flattening: column index = c*V + v
    sd_flat = jnp.transpose(params['shapedirs'], (2, 1, 0)).reshape(NUM_BETAS, 3 * V)
    pd_flat = jnp.transpose(params['posedirs'], (2, 1, 0)).reshape(POSE_BASIS, 3 * V)
    vt_flat = params['v_template'].T.reshape(1, 3 * V)
    blend_w = jnp.concatenate([sd_flat, pd_flat, vt_flat], axis=0)       # (218, 3V)

    # Fold the kinematic-joint regression into coefficient space (exact):
    #   J[:, j, c] = (beta @ sd_c + vt_c) @ Jreg^T  ==  coeff @ jblend
    jreg_t = params['J_regressor'].T                                     # (V, 24)
    jblend = jnp.zeros((COEFF_K, J_COLS), f32)
    for c in range(3):
        cols = slice(c * J_STRIDE, c * J_STRIDE + NUM_JOINTS)
        jblend = jblend.at[:NUM_BETAS, cols].set(
            sd_flat[:, c * V:(c + 1) * V] @ jreg_t)
        jblend = jblend.at[COEFF_K - 1, cols].set(
            (vt_flat[:, c * V:(c + 1) * V] @ jreg_t)[0])

    # Shared (V, JOUT_PAD) output-joint regressor (applied once per channel).
    jout = jnp.zeros((V, JOUT_PAD), f32).at[:, :NUM_OUT_JOINTS].set(
        params['joint_regressor'].T)

    return dict(blend_w=blend_w.astype(bf16),
                jblend=jblend.astype(bf16),
                w_t=params['weights'].T.astype(bf16),                    # (24, V)
                jout=jout.astype(bf16))


# ------------------------------ SMPL forward ------------------------------
def smpl_forward_pallas(prepped, beta, theta):
    f32, bf16 = jnp.float32, jnp.bfloat16
    N = beta.shape[0]
    Npad = ((N + 7) // 8) * 8                     # 8-sublane-aligned batch rows

    # pose feature (depends only on theta)
    Rs = batch_rodrigues(theta.reshape(-1, 3)).reshape(N, NUM_JOINTS, 3, 3)
    pose_feature = (Rs[:, 1:] - jnp.eye(3, dtype=f32)).reshape(N, POSE_BASIS)
    coeff = jnp.concatenate([beta, pose_feature, jnp.ones((N, 1), f32)], axis=1)
    coeff_pad = jnp.zeros((Npad, COEFF_K), f32).at[:N].set(coeff).astype(bf16)

    # ---- kernel 1: fused shape+pose+template blendshapes + folded J regression ----
    vp_flat, j_pad = pl.pallas_call(
        _blendshape_kernel,
        out_shape=(jax.ShapeDtypeStruct((Npad, 3 * V), f32),
                   jax.ShapeDtypeStruct((Npad, J_COLS), f32)),
    )(coeff_pad, prepped['blend_w'], prepped['jblend'])

    J = jnp.stack([j_pad[:N, c * J_STRIDE:c * J_STRIDE + NUM_JOINTS]
                   for c in range(3)], axis=2)                           # (N, 24, 3)

    # ---- tiny sequential kinematic chain (plain JAX) ----
    J_transformed, A = batch_global_rigid_transformation(Rs, J, PARENTS,
                                                         rotate_base=True)
    # stack the 3x4 block of every transform: row = k*Npad + n, k = 4*r + col
    A12 = jnp.transpose(A[:, :, :3, :].reshape(N, NUM_JOINTS, 12), (2, 0, 1))
    A_stack = jnp.zeros((12, Npad, NUM_JOINTS), f32).at[:, :N].set(A12)
    A_stack = A_stack.reshape(12 * Npad, NUM_JOINTS).astype(bf16)        # (12*Npad, 24)

    # ---- kernel 2: LBS skinning + output joint regression ----
    verts_flat, joints_pad = pl.pallas_call(
        _skin_kernel,
        out_shape=(jax.ShapeDtypeStruct((Npad, 3 * V), f32),
                   jax.ShapeDtypeStruct((Npad, 3 * JOUT_PAD), f32)),
    )(vp_flat, A_stack, prepped['w_t'], prepped['jout'])

    verts = jnp.transpose(verts_flat[:N].reshape(N, 3, V), (0, 2, 1))    # (N, V, 3)
    joints = jnp.stack([joints_pad[:N, c * JOUT_PAD:c * JOUT_PAD + NUM_OUT_JOINTS]
                        for c in range(3)], axis=2)                      # (N, 43, 3)
    return verts, joints, J_transformed


# Pure-JAX reference mirroring the PyTorch forward 1:1 (self-check only).
def smpl_forward_reference(params, beta, theta):
    N = beta.shape[0]
    shapedirs_flat = params['shapedirs'].reshape(-1, NUM_BETAS).T        # (NB, 3V)
    posedirs_flat = params['posedirs'].reshape(-1, POSE_BASIS).T         # (207, 3V)
    v_shaped = jnp.matmul(beta, shapedirs_flat).reshape(N, V, 3) + params['v_template']
    Jx = jnp.matmul(v_shaped[:, :, 0], params['J_regressor'].T)
    Jy = jnp.matmul(v_shaped[:, :, 1], params['J_regressor'].T)
    Jz = jnp.matmul(v_shaped[:, :, 2], params['J_regressor'].T)
    J = jnp.stack([Jx, Jy, Jz], axis=2)
    Rs = batch_rodrigues(theta.reshape(-1, 3)).reshape(N, NUM_JOINTS, 3, 3)
    pose_feature = (Rs[:, 1:] - jnp.eye(3, dtype=jnp.float32)).reshape(N, POSE_BASIS)
    v_posed = jnp.matmul(pose_feature, posedirs_flat).reshape(N, V, 3) + v_shaped
    J_transformed, A = batch_global_rigid_transformation(Rs, J, PARENTS,
                                                         rotate_base=True)
    W = jnp.broadcast_to(params['weights'][None], (N, V, NUM_JOINTS))
    T = jnp.matmul(W, A.reshape(N, NUM_JOINTS, 16)).reshape(N, V, 4, 4)
    v_posed_homo = jnp.concatenate(
        [v_posed, jnp.ones((N, V, 1), jnp.float32)], axis=2)
    v_homo = jnp.matmul(T, v_posed_homo[..., None])
    verts = v_homo[:, :, :3, 0]
    joints = jnp.transpose(
        jnp.matmul(jnp.transpose(verts, (0, 2, 1)), params['joint_regressor'].T),
        (0, 2, 1))
    return verts, joints, J_transformed


# ------------------------------ deterministic params ------------------------------
def make_params(key):
    ks = jax.random.split(key, 6)
    v_template = jax.random.normal(ks[0], (V, 3), jnp.float32) * 0.5
    shapedirs = jax.random.normal(ks[1], (V, 3, NUM_BETAS), jnp.float32) * 0.03
    posedirs = jax.random.normal(ks[2], (V, 3, POSE_BASIS), jnp.float32) * 0.01
    jr = jnp.abs(jax.random.normal(ks[3], (NUM_JOINTS, V), jnp.float32))
    J_regressor = jr / jnp.sum(jr, axis=1, keepdims=True)
    w = jnp.abs(jax.random.normal(ks[4], (V, NUM_JOINTS), jnp.float32))
    weights = w / jnp.sum(w, axis=1, keepdims=True)
    jr2 = jnp.abs(jax.random.normal(ks[5], (NUM_OUT_JOINTS, V), jnp.float32))
    joint_regressor = jr2 / jnp.sum(jr2, axis=1, keepdims=True)
    return dict(v_template=v_template, shapedirs=shapedirs, posedirs=posedirs,
                J_regressor=J_regressor, weights=weights,
                joint_regressor=joint_regressor)


if __name__ == "__main__":
    key = jax.random.PRNGKey(0)
    k_params, k_beta, k_theta, k_faces = jax.random.split(key, 4)
    params = make_params(k_params)
    beta = jax.random.normal(k_beta, (BATCH, NUM_BETAS), jnp.float32) * 0.5
    theta = jax.random.normal(k_theta, (BATCH, NUM_JOINTS * 3), jnp.float32) * 0.2
    faces = jax.random.randint(k_faces, (64, 3), 0, V, jnp.int32)  # synthetic mesh faces

    prepped = prepare_smpl_params(params)          # one-time weight prep (not per call)
    fwd = jax.jit(smpl_forward_pallas)
    verts, joints, _ = fwd(prepped, beta, theta)
    jax.block_until_ready((verts, joints))

    verts_ref, joints_ref, _ = smpl_forward_reference(params, beta, theta)
    assert verts.shape == (BATCH, V, 3) and joints.shape == (BATCH, NUM_OUT_JOINTS, 3)
    assert np.allclose(np.asarray(verts), np.asarray(verts_ref), rtol=5e-2, atol=5e-2)
    assert np.allclose(np.asarray(joints), np.asarray(joints_ref), rtol=5e-2, atol=5e-2)
    print("KERNEL_OK")
</pallas_src>

<mosaic_0001>
module attributes {stable_mosaic.version = 11 : i64} {
  func.func @_blendshape_kernel(%arg0: memref<8x218xbf16, #tpu.memory_space<vmem>>, %arg1: memref<218x384xbf16, #tpu.memory_space<vmem>>, %arg2: memref<218x128xbf16, #tpu.memory_space<vmem>>, %arg3: memref<8x384xf32, #tpu.memory_space<vmem>>, %arg4: memref<8x128xf32, #tpu.memory_space<vmem>>) attributes {dimension_semantics = [], scalar_prefetch = 0 : i64, scratch_operands = 0 : i64, tpu.core_type = #tpu.core_type<tc>} {
    %c0 = arith.constant 0 : index
    %c0_0 = arith.constant 0 : index
    %0 = vector.load %arg0[%c0, %c0_0] : memref<8x218xbf16, #tpu.memory_space<vmem>>, vector<8x218xbf16>
    %c0_1 = arith.constant 0 : index
    %c0_2 = arith.constant 0 : index
    %1 = vector.load %arg1[%c0_1, %c0_2] : memref<218x384xbf16, #tpu.memory_space<vmem>>, vector<218x384xbf16>
    %cst = arith.constant dense<0.000000e+00> : vector<8x384xf32>
    %2 = tpu.matmul %0, %1, %cst {dimension_numbers = #tpu.dot_dimension_numbers<[1], [0], [0], [1], [0, 0, 1, 1], [], []>} : vector<8x218xbf16>, vector<218x384xbf16>, vector<8x384xf32> -> vector<8x384xf32>
    %c0_3 = arith.constant 0 : index
    %c0_4 = arith.constant 0 : index
    %3 = vector.load %arg3[%c0_3, %c0_4] : memref<8x384xf32, #tpu.memory_space<vmem>>, vector<8x384xf32>
    tpu.vector_store %arg3[%c0_3, %c0_4], %2 {strides = array<i32>} : memref<8x384xf32, #tpu.memory_space<vmem>>, vector<8x384xf32>,
    %c0_5 = arith.constant 0 : index
    %c0_6 = arith.constant 0 : index
    %4 = vector.load %arg2[%c0_5, %c0_6] : memref<218x128xbf16, #tpu.memory_space<vmem>>, vector<218x128xbf16>
    %cst_7 = arith.constant dense<0.000000e+00> : vector<8x128xf32>
    %5 = tpu.matmul %0, %4, %cst_7 {dimension_numbers = #tpu.dot_dimension_numbers<[1], [0], [0], [1], [0, 0, 1, 1], [], []>} : vector<8x218xbf16>, vector<218x128xbf16>, vector<8x128xf32> -> vector<8x128xf32>
    %c0_8 = arith.constant 0 : index
    %c0_9 = arith.constant 0 : index
    %6 = vector.load %arg4[%c0_8, %c0_9] : memref<8x128xf32, #tpu.memory_space<vmem>>, vector<8x128xf32>
    tpu.vector_store %arg4[%c0_8, %c0_9], %5 {strides = array<i32>} : memref<8x128xf32, #tpu.memory_space<vmem>>, vector<8x128xf32>,
    return
  }
}

module attributes {stable_mosaic.version = 11 : i64} {
  func.func @_skin_kernel(%arg0: memref<8x384xf32, #tpu.memory_space<vmem>>, %arg1: memref<96x24xbf16, #tpu.memory_space<vmem>>, %arg2: memref<24x128xbf16, #tpu.memory_space<vmem>>, %arg3: memref<128x64xbf16, #tpu.memory_space<vmem>>, %arg4: memref<8x384xf32, #tpu.memory_space<vmem>>, %arg5: memref<8x192xf32, #tpu.memory_space<vmem>>) attributes {dimension_semantics = [], scalar_prefetch = 0 : i64, scratch_operands = 0 : i64, tpu.core_type = #tpu.core_type<tc>} {
    %c0 = arith.constant 0 : index
    %c0_0 = arith.constant 0 : index
    %0 = vector.load %arg1[%c0, %c0_0] : memref<96x24xbf16, #tpu.memory_space<vmem>>, vector<96x24xbf16>
    %c0_1 = arith.constant 0 : index
    %c0_2 = arith.constant 0 : index
    %1 = vector.load %arg2[%c0_1, %c0_2] : memref<24x128xbf16, #tpu.memory_space<vmem>>, vector<24x128xbf16>
    %cst = arith.constant dense<0.000000e+00> : vector<96x128xf32>
    %2 = tpu.matmul %0, %1, %cst {dimension_numbers = #tpu.dot_dimension_numbers<[1], [0], [0], [1], [0, 0, 1, 1], [], []>} : vector<96x24xbf16>, vector<24x128xbf16>, vector<96x128xf32> -> vector<96x128xf32>
    %c0_3 = arith.constant 0 : index
    %c0_4 = arith.constant 0 : index
    %3 = vector.load %arg0[%c0_3, %c0_4] : memref<8x384xf32, #tpu.memory_space<vmem>>, vector<8x128xf32>
    %c0_5 = arith.constant 0 : index
    %c128 = arith.constant 128 : index
    %4 = vector.load %arg0[%c0_5, %c128] : memref<8x384xf32, #tpu.memory_space<vmem>>, vector<8x128xf32>
    %c0_6 = arith.constant 0 : index
    %c256 = arith.constant 256 : index
    %5 = vector.load %arg0[%c0_6, %c256] : memref<8x384xf32, #tpu.memory_space<vmem>>, vector<8x128xf32>
    %c0_7 = arith.constant 0 : index
    %c0_8 = arith.constant 0 : index
    %6 = vector.load %arg3[%c0_7, %c0_8] : memref<128x64xbf16, #tpu.memory_space<vmem>>, vector<128x64xbf16>
    %7 = vector.extract_strided_slice %2 {offsets = [0, 0], sizes = [8, 128], strides = [1, 1]} : vector<96x128xf32> to vector<8x128xf32>
    %8 = arith.mulf %7, %3 : vector<8x128xf32>
    %9 = vector.extract_strided_slice %2 {offsets = [8, 0], sizes = [8, 128], strides = [1, 1]} : vector<96x128xf32> to vector<8x128xf32>
    %10 = arith.mulf %9, %4 : vector<8x128xf32>
    %11 = arith.addf %8, %10 : vector<8x128xf32>
    %12 = vector.extract_strided_slice %2 {offsets = [16, 0], sizes = [8, 128], strides = [1, 1]} : vector<96x128xf32> to vector<8x128xf32>
    %13 = arith.mulf %12, %5 : vector<8x128xf32>
    %14 = arith.addf %11, %13 : vector<8x128xf32>
    %15 = vector.extract_strided_slice %2 {offsets = [24, 0], sizes = [8, 128], strides = [1, 1]} : vector<96x128xf32> to vector<8x128xf32>
    %16 = arith.addf %14, %15 : vector<8x128xf32>
    %c0_9 = arith.constant 0 : index
    %c0_10 = arith.constant 0 : index
    %17 = vector.load %arg4[%c0_9, %c0_10] : memref<8x384xf32, #tpu.memory_space<vmem>>, vector<8x128xf32>
    tpu.vector_store %arg4[%c0_9, %c0_10], %16 {strides = array<i32>} : memref<8x384xf32, #tpu.memory_space<vmem>>, vector<8x128xf32>,
    %18 = arith.truncf %16 : vector<8x128xf32> to vector<8x128xbf16>
    %cst_11 = arith.constant dense<0.000000e+00> : vector<8x64xf32>
    %19 = tpu.matmul %18, %6, %cst_11 {dimension_numbers = #tpu.dot_dimension_numbers<[1], [0], [0], [1], [0, 0, 1, 1], [], []>} : vector<8x128xbf16>, vector<128x64xbf16>, vector<8x64xf32> -> vector<8x64xf32>
    %c0_12 = arith.constant 0 : index
    %c0_13 = arith.constant 0 : index
    %20 = vector.load %arg5[%c0_12, %c0_13] : memref<8x192xf32, #tpu.memory_space<vmem>>, vector<8x64xf32>
    tpu.vector_store %arg5[%c0_12, %c0_13], %19 {strides = array<i32>} : memref<8x192xf32, #tpu.memory_space<vmem>>, vector<8x64xf32>,
    %21 = vector.extract_strided_slice %2 {offsets = [32, 0], sizes = [8, 128], strides = [1, 1]} : vector<96x128xf32> to vector<8x128xf32>
    %22 = arith.mulf %21, %3 : vector<8x128xf32>
    %23 = vector.extract_strided_slice %2 {offsets = [40, 0], sizes = [8, 128], strides = [1, 1]} : vector<96x128xf32> to vector<8x128xf32>
    %24 = arith.mulf %23, %4 : vector<8x128xf32>
    %25 = arith.addf %22, %24 : vector<8x128xf32>
    %26 = vector.extract_strided_slice %2 {offsets = [48, 0], sizes = [8, 128], strides = [1, 1]} : vector<96x128xf32> to vector<8x128xf32>
    %27 = arith.mulf %26, %5 : vector<8x128xf32>
    %28 = arith.addf %25, %27 : vector<8x128xf32>
    %29 = vector.extract_strided_slice %2 {offsets = [56, 0], sizes = [8, 128], strides = [1, 1]} : vector<96x128xf32> to vector<8x128xf32>
    %30 = arith.addf %28, %29 : vector<8x128xf32>
    %c0_14 = arith.constant 0 : index
    %c128_15 = arith.constant 128 : index
    %31 = vector.load %arg4[%c0_14, %c128_15] : memref<8x384xf32, #tpu.memory_space<vmem>>, vector<8x128xf32>
    tpu.vector_store %arg4[%c0_14, %c128_15], %30 {strides = array<i32>} : memref<8x384xf32, #tpu.memory_space<vmem>>, vector<8x128xf32>,
    %32 = arith.truncf %30 : vector<8x128xf32> to vector<8x128xbf16>
    %cst_16 = arith.constant dense<0.000000e+00> : vector<8x64xf32>
    %33 = tpu.matmul %32, %6, %cst_16 {dimension_numbers = #tpu.dot_dimension_numbers<[1], [0], [0], [1], [0, 0, 1, 1], [], []>} : vector<8x128xbf16>, vector<128x64xbf16>, vector<8x64xf32> -> vector<8x64xf32>
    %c0_17 = arith.constant 0 : index
    %c64 = arith.constant 64 : index
    %34 = vector.load %arg5[%c0_17, %c64] : memref<8x192xf32, #tpu.memory_space<vmem>>, vector<8x64xf32>
    tpu.vector_store %arg5[%c0_17, %c64], %33 {strides = array<i32>} : memref<8x192xf32, #tpu.memory_space<vmem>>, vector<8x64xf32>,
    %35 = vector.extract_strided_slice %2 {offsets = [64, 0], sizes = [8, 128], strides = [1, 1]} : vector<96x128xf32> to vector<8x128xf32>
    %36 = arith.mulf %35, %3 : vector<8x128xf32>
    %37 = vector.extract_strided_slice %2 {offsets = [72, 0], sizes = [8, 128], strides = [1, 1]} : vector<96x128xf32> to vector<8x128xf32>
    %38 = arith.mulf %37, %4 : vector<8x128xf32>
    %39 = arith.addf %36, %38 : vector<8x128xf32>
    %40 = vector.extract_strided_slice %2 {offsets = [80, 0], sizes = [8, 128], strides = [1, 1]} : vector<96x128xf32> to vector<8x128xf32>
    %41 = arith.mulf %40, %5 : vector<8x128xf32>
    %42 = arith.addf %39, %41 : vector<8x128xf32>
    %43 = vector.extract_strided_slice %2 {offsets = [88, 0], sizes = [8, 128], strides = [1, 1]} : vector<96x128xf32> to vector<8x128xf32>
    %44 = arith.addf %42, %43 : vector<8x128xf32>
    %c0_18 = arith.constant 0 : index
    %c256_19 = arith.constant 256 : index
    %45 = vector.load %arg4[%c0_18, %c256_19] : memref<8x384xf32, #tpu.memory_space<vmem>>, vector<8x128xf32>
    tpu.vector_store %arg4[%c0_18, %c256_19], %44 {strides = array<i32>} : memref<8x384xf32, #tpu.memory_space<vmem>>, vector<8x128xf32>,
    %46 = arith.truncf %44 : vector<8x128xf32> to vector<8x128xbf16>
    %cst_20 = arith.constant dense<0.000000e+00> : vector<8x64xf32>
    %47 = tpu.matmul %46, %6, %cst_20 {dimension_numbers = #tpu.dot_dimension_numbers<[1], [0], [0], [1], [0, 0, 1, 1], [], []>} : vector<8x128xbf16>, vector<128x64xbf16>, vector<8x64xf32> -> vector<8x64xf32>
    %c0_21 = arith.constant 0 : index
    %c128_22 = arith.constant 128 : index
    %48 = vector.load %arg5[%c0_21, %c128_22] : memref<8x192xf32, #tpu.memory_space<vmem>>, vector<8x64xf32>
    tpu.vector_store %arg5[%c0_21, %c128_22], %47 {strides = array<i32>} : memref<8x192xf32, #tpu.memory_space<vmem>>, vector<8x64xf32>,
    return
  }
}

</mosaic_0001>

<bundles_post_ra>
// kernel: smpl_forward_pallas.2
= control target key start
LH: loop header
LB: loop body
LE: loop exit
PB: predicated region body
PF: predicated region fallthrough
CT: control target
= control target key end

     0   :  { %v697_v1 = vmov 0   ;;  %vm301_vm0 = vcmask 736256   ;;  %vm305_vm1 = vcmask 1044480   ;;  %s952_s1 = inlined_call_operand.vmem [shape: bf16[218,384], index: 1, kind: input, shape index: {}]   ;;  %s953_s0 = inlined_call_operand.vmem [shape: bf16[8,218], index: 0, kind: input, shape index: {}]   ;;  %s954_s2 = inlined_call_operand.vmem [shape: bf16[218,128], index: 2, kind: input, shape index: {}]   ;;  %s955_s3 = inlined_call_operand.vmem [shape: f32[8,384], index: 3, kind: output, shape index: {0}]   ;;  %s956_s4 = inlined_call_operand.vmem [shape: f32[8,128], index: 4, kind: output, shape index: {1}]  }
   0x1   :  { %v625_v0 = vld [vmem:[%s952_s1 + $0x4] ss:$12 sps:$4 sm:$0xff]   ;;  %356 = vmatprep.subr.bf16.mxu1 %v697_v1  ;;  %v627_v2 = vld [vmem:[%s952_s1] ss:$12 sps:$4 sm:$0xff]   ;;  %v628_v3 = vld [vmem:[%s952_s1 + $0x1c] ss:$12 sps:$4 sm:$0xff]  }
   0x2   :  { %315 = vmatprep.subr.bf16.mxu0 %v625_v0  ;;  %v630_v4 = vld [vmem:[%s952_s1 + $0x18] ss:$12 sps:$4 sm:$0xff]   ;;  %v631_v5 = vld [vmem:[%s952_s1 + $0x34] ss:$12 sps:$4 sm:$0xff]   ;;  %v633_v6 = vld [vmem:[%s952_s1 + $0x30] ss:$12 sps:$4 sm:$0xff]  }
   0x3   :  { %316 = vmatpush1.bf16.msra.mxu0 %v627_v2  ;;  %v634_v7 = vld [vmem:[%s952_s1 + $0x4c] ss:$12 sps:$4 sm:$0xff]   ;;  %v636_v8 = vld [vmem:[%s952_s1 + $0x48] ss:$12 sps:$4 sm:$0xff]   ;;  %v637_v9 = vld [vmem:[%s952_s1 + $0x64] ss:$12 sps:$4 sm:$0xff]  }
   0x4   :  { %317 = vmatprep.subr.bf16.mxu0 %v628_v3  ;;  %v639_v10 = vld [vmem:[%s952_s1 + $0x60] ss:$12 sps:$4 sm:$0xff]   ;;  %v640_v11 = vld [vmem:[%s952_s1 + $0x7c] ss:$12 sps:$4 sm:$0xff]   ;;  %v642_v12 = vld [vmem:[%s952_s1 + $0x78] ss:$12 sps:$4 sm:$0xff]  }
   0x5   :  { %v643_v13 = vld [vmem:[%s952_s1 + $0x94] ss:$12 sps:$4 sm:$0xff]   ;;  %v645_v18 = vld [vmem:[%s952_s1 + $0x90] ss:$12 sps:$4 sm:$0xff]   ;;  %v646_v19 = vld [vmem:[%s952_s1 + $0xac] ss:$12 sps:$4 sm:$0xff]  }
   0x6   :  { %v667_v14 = vld [vmem:[%s952_s1 + $0x8] ss:$12 sps:$4 sm:$0xff]   ;;  %v769_v15 = vld [vmem:[%s953_s0] sm:$0xff]  ;;  %v675_v23 = vld [vmem:[%s952_s1 + $0x50] ss:$12 sps:$4 sm:$0xff]  }
   0x7   :  { %318 = vmatpush1.bf16.msra.mxu0 %v630_v4  ;;  %357 = vmatpush1.bf16.msra.mxu1 %v667_v14  ;;  %v773_v16 = vcombine.high %v769_v15, %v769_v15  ;;  %v671_v17 = vld [vmem:[%s952_s1 + $0x20] ss:$12 sps:$4 sm:$0xff]   ;;  %v673_v20 = vld [vmem:[%s952_s1 + $0x38] ss:$12 sps:$4 sm:$0xff]   ;;  %v648_v21 = vld [vmem:[%s952_s1 + $0xa8] ss:$12 sps:$4 sm:$0xff]   ;;  %v562_v42 = vcombine.low %v769_v15, %v769_v15 }
   0x8   :  { %319 = vmatprep.subr.bf16.mxu0 %v631_v5  ;;  %358 = vmatprep.subr.bf16.mxu1 %v697_v1  ;;  %v649_v22 = vld [vmem:[%s952_s1 + $0xc4] ss:$12 sps:$4 sm:$0xff]   ;;  %v651_v24 = vld [vmem:[%s952_s1 + $0xc0] ss:$12 sps:$4 sm:$0xff]   ;;  %v652_v25 = vld [vmem:[%s952_s1 + $0xdc] ss:$12 sps:$4 sm:$0xff]  }
   0x9   :  { %607 = vmatprep.mubr.msk.bf16.mxu0 %vm301_vm0, %v773_v16  ;;  %608 = vmatprep.mubr.msk.bf16.mxu1 %vm301_vm0, %v773_v16  ;;  %v677_v26 = vld [vmem:[%s952_s1 + $0x68] ss:$12 sps:$4 sm:$0xff]   ;;  %v654_v27 = vld [vmem:[%s952_s1 + $0xd8] ss:$12 sps:$4 sm:$0xff]   ;;  %v679_v29 = vld [vmem:[%s952_s1 + $0x80] ss:$12 sps:$4 sm:$0xff]  }
   0xa   :  { %v655_v28 = vld [vmem:[%s952_s1 + $0xf4] ss:$12 sps:$4 sm:$0xff]   ;;  %v657_v30 = vld [vmem:[%s952_s1 + $0xf0] ss:$12 sps:$4 sm:$0xff]   ;;  %v658_v31 = vld [vmem:[%s952_s1 + $0x10c] ss:$12 sps:$4 sm:$0xff]  }
   0xb   :  { %320 = vmatpush1.bf16.msra.mxu0 %v633_v6  ;;  %359 = vmatpush1.bf16.msra.mxu1 %v671_v17  ;;  %v681_v32 = vld [vmem:[%s952_s1 + $0x98] ss:$12 sps:$4 sm:$0xff]   ;;  %v660_v33 = vld [vmem:[%s952_s1 + $0x108] ss:$12 sps:$4 sm:$0xff]   ;;  %v683_v35 = vld [vmem:[%s952_s1 + $0xb0] ss:$12 sps:$4 sm:$0xff]  }
   0xc   :  { %321 = vmatprep.subr.bf16.mxu0 %v634_v7  ;;  %360 = vmatprep.subr.bf16.mxu1 %v697_v1  ;;  %v661_v34 = vld [vmem:[%s952_s1 + $0x124] ss:$12 sps:$4 sm:$0xff]   ;;  %v663_v36 = vld [vmem:[%s952_s1 + $0x120] ss:$12 sps:$4 sm:$0xff]   ;;  %v685_v39 = vld [vmem:[%s952_s1 + $0xc8] ss:$12 sps:$4 sm:$0xff]  }
   0xd   :  { %v664_v37 = vld [vmem:[%s952_s1 + $0x13c] ss:$12 sps:$4 sm:$0x1f]   ;;  %v666_v38 = vld [vmem:[%s952_s1 + $0x138] ss:$12 sps:$4 sm:$0x1f]  }
   0xe   :  { %v307_v40 = vsel %vm305_vm1, %v666_v38, 0  ;;  %v687_v41 = vld [vmem:[%s952_s1 + $0xe0] ss:$12 sps:$4 sm:$0xff]   ;;  %v689_v44 = vld [vmem:[%s952_s1 + $0xf8] ss:$12 sps:$4 sm:$0xff]   ;;  %v674_v47 = vld [vmem:[%s954_s2 + $0x10] sm:$0xff]  }
   0xf   :  { %322 = vmatpush1.bf16.msra.mxu0 %v636_v8  ;;  %361 = vmatpush1.bf16.msra.mxu1 %v673_v20  ;;  %v670_v43 = vld [vmem:[%s954_s2] sm:$0xff]   ;;  %v672_v45 = vld [vmem:[%s954_s2 + $0x8] sm:$0xff]   ;;  %v691_v46 = vld [vmem:[%s952_s1 + $0x110] ss:$12 sps:$4 sm:$0xff]  }
  0x10   :  { %323 = vmatprep.subr.bf16.mxu0 %v637_v9  ;;  %362 = vmatprep.subr.bf16.mxu1 %v697_v1  ;;  %v693_v48 = vld [vmem:[%s952_s1 + $0x128] ss:$12 sps:$4 sm:$0xff]   ;;  %v695_v49 = vld [vmem:[%s952_s1 + $0x140] ss:$12 sps:$4 sm:$0x1f]   ;;  %v676_v50 = vld [vmem:[%s954_s2 + $0x18] sm:$0xff]  }
  0x11   :  { %v313_v51 = vsel %vm305_vm1, %v695_v49, 0  ;;  %v678_v52 = vld [vmem:[%s954_s2 + $0x20] sm:$0xff]   ;;  %v680_v53 = vld [vmem:[%s954_s2 + $0x28] sm:$0xff]   ;;  %v682_v54 = vld [vmem:[%s954_s2 + $0x30] sm:$0xff]  }
  0x12   :  { %v684_v55 = vld [vmem:[%s954_s2 + $0x38] sm:$0xff]   ;;  %v686_v56 = vld [vmem:[%s954_s2 + $0x40] sm:$0xff]   ;;  %v688_v57 = vld [vmem:[%s954_s2 + $0x48] sm:$0xff]  }
  0x13   :  { %324 = vmatpush1.bf16.msra.mxu0 %v639_v10  ;;  %363 = vmatpush1.bf16.msra.mxu1 %v675_v23  ;;  %v690_v58 = vld [vmem:[%s954_s2 + $0x50] sm:$0xff]   ;;  %v692_v59 = vld [vmem:[%s954_s2 + $0x58] sm:$0xff]   ;;  %v694_v60 = vld [vmem:[%s954_s2 + $0x60] sm:$0xff]  }
  0x14   :  { %325 = vmatprep.subr.bf16.mxu0 %v640_v11  ;;  %364 = vmatprep.subr.bf16.mxu1 %v697_v1  ;;  %v696_v61 = vld [vmem:[%s954_s2 + $0x68] sm:$0x1f]  }
  0x15   :  { %v511_v62 = vsel %vm305_vm1, %v696_v61, 0 }
  0x17   :  { %326 = vmatpush1.bf16.msra.mxu0 %v642_v12  ;;  %365 = vmatpush1.bf16.msra.mxu1 %v677_v26 }
  0x18   :  { %327 = vmatprep.subr.bf16.mxu0 %v643_v13  ;;  %366 = vmatprep.subr.bf16.mxu1 %v697_v1 }
  0x1b   :  { %328 = vmatpush1.bf16.msra.mxu0 %v645_v18  ;;  %367 = vmatpush1.bf16.msra.mxu1 %v679_v29 }
  0x1c   :  { %329 = vmatprep.subr.bf16.mxu0 %v646_v19  ;;  %368 = vmatprep.subr.bf16.mxu1 %v697_v1 }
  0x1f   :  { %330 = vmatpush1.bf16.msra.mxu0 %v648_v21  ;;  %369 = vmatpush1.bf16.msra.mxu1 %v681_v32 }
  0x20   :  { %331 = vmatprep.subr.bf16.mxu0 %v649_v22  ;;  %370 = vmatprep.subr.bf16.mxu1 %v697_v1 }
  0x23   :  { %332 = vmatpush1.bf16.msra.mxu0 %v651_v24  ;;  %371 = vmatpush1.bf16.msra.mxu1 %v683_v35 }
  0x24   :  { %333 = vmatprep.subr.bf16.mxu0 %v652_v25  ;;  %372 = vmatprep.subr.bf16.mxu1 %v697_v1 }
  0x27   :  { %334 = vmatpush1.bf16.msra.mxu0 %v654_v27  ;;  %373 = vmatpush1.bf16.msra.mxu1 %v685_v39 }
  0x28   :  { %335 = vmatprep.subr.bf16.mxu0 %v655_v28  ;;  %374 = vmatprep.subr.bf16.mxu1 %v697_v1 }
  0x2b   :  { %336 = vmatpush1.bf16.msra.mxu0 %v657_v30  ;;  %375 = vmatpush1.bf16.msra.mxu1 %v687_v41 }
  0x2c   :  { %337 = vmatprep.subr.bf16.mxu0 %v658_v31  ;;  %376 = vmatprep.subr.bf16.mxu1 %v697_v1 }
  0x2f   :  { %338 = vmatpush1.bf16.msra.mxu0 %v660_v33  ;;  %377 = vmatpush1.bf16.msra.mxu1 %v689_v44 }
  0x30   :  { %339 = vmatprep.subr.bf16.mxu0 %v661_v34  ;;  %378 = vmatprep.subr.bf16.mxu1 %v697_v1 }
  0x33   :  { %340 = vmatpush1.bf16.msra.mxu0 %v663_v36  ;;  %379 = vmatpush1.bf16.msra.mxu1 %v691_v46 }
  0x34   :  { %606 = vmatprep.subr.msk.bf16.mxu0 %vm305_vm1, %v664_v37  ;;  %380 = vmatprep.subr.bf16.mxu1 %v697_v1 }
  0x37   :  { %342 = vmatpush1.bf16.msra.mxu0 %v307_v40  ;;  %381 = vmatpush1.bf16.msra.mxu1 %v693_v48 }
  0x38   :  { %513 = vmatprep.subr.bf16.mxu0 %v697_v1  ;;  %382 = vmatprep.subr.bf16.mxu1 %v697_v1 }
  0x3a   :  { %348 = vmatmul.mubr.bf16.vlgmr.msra.gmra.mrb[0].mxu0 %v562_v42 }
  0x3b   :  { %514 = vmatpush1.bf16.msra.mxu0 %v670_v43  ;;  %623 = vmatprep.mubr.msk.bf16.mxu0 %vm301_vm0, %v773_v16 }
  0x3c   :  { %515 = vmatprep.subr.bf16.mxu0 %v697_v1  ;;  %383 = vmatpush1.bf16.msra.mxu1 %v313_v51 }
  0x3f   :  { %516 = vmatpush1.bf16.msra.mxu0 %v672_v45  ;;  %389 = vmatmul.mubr.bf16.vlgmr.msra.gmra.mrb[0].mxu1 %v562_v42 }
  0x40   :  { %517 = vmatprep.subr.bf16.mxu0 %v697_v1 }
  0x43   :  { %518 = vmatpush1.bf16.msra.mxu0 %v674_v47 }
  0x44   :  { %519 = vmatprep.subr.bf16.mxu0 %v697_v1 }
  0x47   :  { %520 = vmatpush1.bf16.msra.mxu0 %v676_v50 }
  0x48   :  { %521 = vmatprep.subr.bf16.mxu0 %v697_v1 }
  0x4b   :  { %522 = vmatpush1.bf16.msra.mxu0 %v678_v52 }
  0x4c   :  { %523 = vmatprep.subr.bf16.mxu0 %v697_v1 }
  0x4f   :  { %524 = vmatpush1.bf16.msra.mxu0 %v680_v53 }
  0x50   :  { %525 = vmatprep.subr.bf16.mxu0 %v697_v1 }
  0x53   :  { %526 = vmatpush1.bf16.msra.mxu0 %v682_v54 }
  0x54   :  { %527 = vmatprep.subr.bf16.mxu0 %v697_v1 }
  0x57   :  { %528 = vmatpush1.bf16.msra.mxu0 %v684_v55 }
  0x58   :  { %529 = vmatprep.subr.bf16.mxu0 %v697_v1 }
  0x5b   :  { %530 = vmatpush1.bf16.msra.mxu0 %v686_v56 }
  0x5c   :  { %531 = vmatprep.subr.bf16.mxu0 %v697_v1 }
  0x5f   :  { %532 = vmatpush1.bf16.msra.mxu0 %v688_v57 }
  0x60   :  { %533 = vmatprep.subr.bf16.mxu0 %v697_v1 }
  0x63   :  { %534 = vmatpush1.bf16.msra.mxu0 %v690_v58 }
  0x64   :  { %535 = vmatprep.subr.bf16.mxu0 %v697_v1 }
  0x67   :  { %536 = vmatpush1.bf16.msra.mxu0 %v692_v59 }
  0x68   :  { %537 = vmatprep.subr.bf16.mxu0 %v697_v1 }
  0x6b   :  { %538 = vmatpush1.bf16.msra.mxu0 %v694_v60 }
  0x6c   :  { %539 = vmatprep.subr.bf16.mxu0 %v697_v1 }
  0x6f   :  { %540 = vmatpush1.bf16.msra.mxu0 %v511_v62 }
  0x72   :  { %546 = vmatmul.mubr.bf16.vlgmr.msra.gmra.mrb[4].mxu0 %v562_v42 }
 0x10d   :  { %v349_v63 = vpop.f32.mrb[0].mxu0 }
 0x10e   :  { %396 = vst [vmem:[%s955_s3] sm:$0xff] %v349_v63  ;;  %v351_v0 = vpop.f32.mrb[1].mxu0 }
 0x10f   :  { %397 = vst [vmem:[%s955_s3 + $0x8] sm:$0xff] %v351_v0  ;;  %v353_v2 = vpop.f32.mrb[2].mxu0 }
 0x110   :  { %v354_v3 = vpop.f32.mrb[3].mxu0 }
 0x112   :  { %v390_v4 = vpop.f32.mrb[0].mxu1 }
 0x113   :  { %398 = vst [vmem:[%s955_s3 + $0x10] sm:$0xff] %v390_v4  ;;  %v392_v1 = vpop.f32.mrb[1].mxu1 }
 0x114   :  { %v393_v5 = vpop.f32.mrb[2].mxu1 }
 0x115   :  { %v394_v6 = vpop.f32.mrb[3].mxu1 }
 0x145   :  { %v547_v7 = vpop.f32.mrb[4].mxu0 }
 0x146   :  { %553 = vst [vmem:[%s956_s4] sm:$0xff] %v547_v7  ;;  %v549_v8 = vpop.f32.mrb[5].mxu0 }
 0x147   :  { %v550_v9 = vpop.f32.mrb[6].mxu0 }
 0x148   :  { %v551_v10 = vpop.f32.mrb[7].mxu0 }

// kernel: smpl_forward_pallas.3
= control target key start
LH: loop header
LB: loop body
LE: loop exit
PB: predicated region body
PF: predicated region fallthrough
CT: control target
= control target key end

     0   :  { %v559_v0 = vmov 0.0   ;;  %vm74_vm0 = vcmask 195584   ;;  %vm93_vm1 = vcmask 1043456   ;;  %vm560_vm2 = vmmov 0   ;;  %s561_s8 = smov 64   ;;  %s743_s2 = inlined_call_operand.vmem [shape: bf16[24,128], index: 2, kind: input, shape index: {}]   ;;  %s744_s1 = inlined_call_operand.vmem [shape: bf16[96,24], index: 1, kind: input, shape index: {}]   ;;  %s745_s3 = inlined_call_operand.vmem [shape: bf16[128,64], index: 3, kind: input, shape index: {}]   ;;  %s746_s0 = inlined_call_operand.vmem [shape: f32[8,384], index: 0, kind: input, shape index: {}]   ;;  %s747_s4 = inlined_call_operand.vmem [shape: f32[8,384], index: 4, kind: output, shape index: {0}]   ;;  %s748_s5 = inlined_call_operand.vmem [shape: f32[8,192], index: 5, kind: output, shape index: {1}]  }
   0x1   :  { %479 = vmatprep.subr.bf16.mxu1 %v559_v0  ;;  %v543_v1 = vld [vmem:[%s743_s2] sm:$0xff]   ;;  %v544_v2 = vld [vmem:[%s743_s2 + $0x8] ss:$0 sps:$4 sm:$0xff]   ;;  %v547_v6 = vld [vmem:[%s744_s1 + $0x10] sm:$0xff]   ;;  %495 = vmatprep.mubr.msk.bf16.mxu1 %vm560_vm2, %v559_v0  ;;  %vm293_vm3 = vcmask 523264   ;;  %vm347_vm4 = vcmask 1048064  }
   0x2   :  { %v545_v3 = vld [vmem:[%s744_s1] sm:$0xff]   ;;  %463 = vmatprep.subr.bf16.mxu0 %v543_v1  ;;  %v95_v4 = vsel %vm93_vm1, %v544_v2, 0  ;;  %v546_v5 = vld [vmem:[%s744_s1 + $0x8] sm:$0xff]   ;;  %v630_v9 = vld [vmem:[%s745_s3 + $0x10] sm:$0xff]  }
   0x3   :  { %464 = vmatpush3.bf16.msra.mxu0 %v543_v1  ;;  %467 = vmatprep.mubr.msk.bf16.mxu0 %vm74_vm0, %v545_v3  ;;  %v612_v7 = vld [vmem:[%s745_s3] sm:$0xff]   ;;  %v619_v8 = vld [vmem:[%s745_s3 + $0x8] sm:$0xff]   ;;  %v548_v10 = vld [vmem:[%s744_s1 + $0x18] sm:$0xff]  }
   0x4   :  { %539 = vmatprep.subr.msk.bf16.mxu0 %vm93_vm1, %v544_v2  ;;  %480 = vmatpush3.bf16.msra.mxu1 %v612_v7  ;;  %v549_v11 = vld [vmem:[%s744_s1 + $0x20] sm:$0xff]   ;;  %v645_v12 = vld [vmem:[%s745_s3 + $0x18] sm:$0xff]   ;;  %v550_v14 = vld [vmem:[%s744_s1 + $0x28] sm:$0xff]  }
   0x5   :  { %481 = vmatprep.subr.bf16.mxu1 %v559_v0  ;;  %v656_v13 = vld [vmem:[%s745_s3 + $0x20] sm:$0xff]   ;;  %v672_v15 = vld [vmem:[%s745_s3 + $0x28] sm:$0xff]   ;;  %v681_v16 = vld [vmem:[%s745_s3 + $0x30] sm:$0xff]  }
   0x6   :  { %v690_v17 = vld [vmem:[%s745_s3 + $0x38] sm:$0xff]   ;;  %v178_v20 = vld [vmem:[%s746_s0] sm:$0xff]  ;;  %v179_v21 = vld [vmem:[%s746_s0 + $0x8] sm:$0xff] }
   0x7   :  { %466 = vmatpush3.bf16.msra.mxu0 %v95_v4  ;;  %v180_v23 = vld [vmem:[%s746_s0 + $0x10] sm:$0xff] }
   0x8   :  { %499 = vmatprep.subr.bf16.mxu0 %v559_v0  ;;  %482 = vmatpush3.bf16.msra.mxu1 %v619_v8 }
   0x9   :  { %483 = vmatprep.subr.bf16.mxu1 %v559_v0 }
   0xa   :  { %468 = vmatmul.mubr.msk.bf16.vlgmr.msra.gmra.mrb[0].mxu0 %vm74_vm0, %v546_v5 }
   0xb   :  { %471 = vmatprep.mubr.msk.bf16.mxu0 %vm74_vm0, %v547_v6  ;;  %500 = vmatpush3.bf16.msra.mxu0 %v612_v7 }
   0xc   :  { %501 = vmatprep.subr.bf16.mxu0 %v559_v0  ;;  %484 = vmatpush3.bf16.msra.mxu1 %v630_v9 }
   0xd   :  { %485 = vmatprep.subr.bf16.mxu1 %v559_v0 }
   0xf   :  { %502 = vmatpush3.bf16.msra.mxu0 %v619_v8 }
  0x10   :  { %503 = vmatprep.subr.bf16.mxu0 %v559_v0  ;;  %486 = vmatpush3.bf16.msra.mxu1 %v645_v12 }
  0x11   :  { %487 = vmatprep.subr.bf16.mxu1 %v559_v0 }
  0x12   :  { %472 = vmatmul.mubr.msk.bf16.gmra.mrb[4].mxu0 %vm74_vm0, %v548_v10 }
  0x13   :  { %475 = vmatprep.mubr.msk.bf16.mxu0 %vm74_vm0, %v549_v11  ;;  %504 = vmatpush3.bf16.msra.mxu0 %v630_v9 }
  0x14   :  { %505 = vmatprep.subr.bf16.mxu0 %v559_v0  ;;  %488 = vmatpush3.bf16.msra.mxu1 %v656_v13 }
  0x15   :  { %489 = vmatprep.subr.bf16.mxu1 %v559_v0 }
  0x17   :  { %506 = vmatpush3.bf16.msra.mxu0 %v645_v12 }
  0x18   :  { %507 = vmatprep.subr.bf16.mxu0 %v559_v0  ;;  %490 = vmatpush3.bf16.msra.mxu1 %v672_v15 }
  0x19   :  { %491 = vmatprep.subr.bf16.mxu1 %v559_v0 }
  0x1a   :  { %476 = vmatmul.mubr.msk.bf16.gmra.mrb[8].mxu0 %vm74_vm0, %v550_v14 }
  0x1b   :  { %508 = vmatpush3.bf16.msra.mxu0 %v656_v13  ;;  %515 = vmatprep.mubr.msk.bf16.mxu0 %vm560_vm2, %v559_v0 }
  0x1c   :  { %509 = vmatprep.subr.bf16.mxu0 %v559_v0  ;;  %492 = vmatpush3.bf16.msra.mxu1 %v681_v16 }
  0x1d   :  { %493 = vmatprep.subr.bf16.mxu1 %v559_v0 }
  0x1f   :  { %510 = vmatpush3.bf16.msra.mxu0 %v672_v15 }
  0x20   :  { %511 = vmatprep.subr.bf16.mxu0 %v559_v0  ;;  %494 = vmatpush3.bf16.msra.mxu1 %v690_v17 }
  0x21   :  { %519 = vmatprep.subr.bf16.mxu1 %v559_v0 }
  0x23   :  { %512 = vmatpush3.bf16.msra.mxu0 %v681_v16 }
  0x24   :  { %513 = vmatprep.subr.bf16.mxu0 %v559_v0 }
  0x27   :  { %514 = vmatpush3.bf16.msra.mxu0 %v690_v17 }
  0xdd   :  { %v469_v18 = vpop.f32.mrb[0].mxu0 }
  0xde   :  { %v131_v19 = vpop.f32.mrb[1].mxu0  ;;  %v200_v27 = vmul.f32 %v469_v18, %v180_v23 }
  0xdf   :  { %v470_v22 = vpop.f32.mrb[2].mxu0  ;;  %v197_v25 = vmul.f32 %v178_v20, %v131_v19 }
  0xe0   :  { %v134_v24 = vpop.f32.mrb[3].mxu0 }
  0xe1   :  { %v198_v26 = vmul.f32 %v179_v21, %v134_v24 }
  0xe3   :  { %v199_v28 = vadd.f32 %v198_v26, %v197_v25 }
  0xe5   :  { %v201_v29 = vadd.f32 %v200_v27, %v199_v28  ;;  %v473_v30 = vpop.f32.mrb[4].mxu0 }
  0xe6   :  { %v147_v31 = vpop.f32.mrb[5].mxu0  ;;  %v298_v38 = vmul.f32 %v473_v30, %v180_v23 }
  0xe7   :  { %v474_v32 = vpop.f32.mrb[6].mxu0  ;;  %v202_v33 = vadd.f32 %v470_v22, %v201_v29  ;;  %v295_v35 = vmul.f32 %v178_v20, %v147_v31 }
  0xe8   :  { %v150_v34 = vpop.f32.mrb[7].mxu0 }
  0xe9   :  { %v296_v36 = vmul.f32 %v179_v21, %v150_v34  ;;  %203 = vst [vmem:[%s747_s4] sm:$0xff] %v202_v33  ;;  %v204_v37 = vpack.c.bf16 %v202_v33, %v202_v33 }
  0xeb   :  { %v297_v39 = vadd.f32 %v296_v36, %v295_v35  ;;  %496 = vmatmul.mubr.bf16.vlgmr.msra.gmra.mrb[0].mxu1 %v204_v37 }
  0xec   :  { %520 = vmatpush3.bf16.msra.mxu1 %v612_v7  ;;  %535 = vmatprep.mubr.msk.bf16.mxu1 %vm560_vm2, %v559_v0 }
  0xed   :  { %v299_v40 = vadd.f32 %v298_v38, %v297_v39  ;;  %521 = vmatprep.subr.bf16.mxu1 %v559_v0  ;;  %v477_v41 = vpop.f32.mrb[8].mxu0 }
  0xee   :  { %v163_v42 = vpop.f32.mrb[9].mxu0  ;;  %v352_v48 = vmul.f32 %v477_v41, %v180_v23 }
  0xef   :  { %v300_v43 = vadd.f32 %v474_v32, %v299_v40  ;;  %v349_v44 = vmul.f32 %v178_v20, %v163_v42  ;;  %v478_v45 = vpop.f32.mrb[10].mxu0 }
  0xf0   :  { %522 = vmatpush3.bf16.msra.mxu1 %v619_v8  ;;  %v166_v46 = vpop.f32.mrb[11].mxu0 }
  0xf1   :  { %301 = vst [vmem:[%s747_s4 + $0x8] sm:$0xff] %v300_v43  ;;  %v302_v47 = vpack.c.bf16 %v300_v43, %v300_v43  ;;  %523 = vmatprep.subr.bf16.mxu1 %v559_v0  ;;  %v350_v49 = vmul.f32 %v179_v21, %v166_v46 }
  0xf3   :  { %516 = vmatmul.mubr.bf16.vlgmr.msra.gmra.mrb[12].mxu0 %v302_v47  ;;  %v351_v50 = vadd.f32 %v350_v49, %v349_v44 }
  0xf4   :  { %524 = vmatpush3.bf16.msra.mxu1 %v630_v9 }
  0xf5   :  { %525 = vmatprep.subr.bf16.mxu1 %v559_v0  ;;  %v353_v51 = vadd.f32 %v352_v48, %v351_v50 }
  0xf7   :  { %v354_v52 = vadd.f32 %v478_v45, %v353_v51 }
  0xf8   :  { %526 = vmatpush3.bf16.msra.mxu1 %v645_v12 }
  0xf9   :  { %527 = vmatprep.subr.bf16.mxu1 %v559_v0  ;;  %355 = vst [vmem:[%s747_s4 + $0x10] sm:$0xff] %v354_v52  ;;  %v356_v53 = vpack.c.bf16 %v354_v52, %v354_v52 }
  0xfc   :  { %528 = vmatpush3.bf16.msra.mxu1 %v656_v13 }
  0xfd   :  { %529 = vmatprep.subr.bf16.mxu1 %v559_v0 }
 0x100   :  { %530 = vmatpush3.bf16.msra.mxu1 %v672_v15 }
 0x101   :  { %531 = vmatprep.subr.bf16.mxu1 %v559_v0 }
 0x104   :  { %532 = vmatpush3.bf16.msra.mxu1 %v681_v16 }
 0x105   :  { %533 = vmatprep.subr.bf16.mxu1 %v559_v0 }
 0x108   :  { %534 = vmatpush3.bf16.msra.mxu1 %v690_v17 }
 0x10b   :  { %536 = vmatmul.mubr.bf16.vlgmr.msra.gmra.mrb[4].mxu1 %v356_v53 }
 0x1be   :  { %v287_v54 = vpop.f32.mrb[0].mxu1 }
 0x1bf   :  { %294 = vst.msk [vmem:[%s748_s5] sm:$0xff] %vm293_vm3, %v287_v54  ;;  %v497_v55 = vpop.f32.mrb[1].mxu1 }
 0x1c0   :  { %v290_v56 = vpop.f32.mrb[2].mxu1 }
 0x1c1   :  { %v498_v57 = vpop.f32.mrb[3].mxu1 }
 0x1c6   :  { %v337_v58 = vpop.f32.mrb[12].mxu0 }
 0x1c7   :  { %v517_v59 = vpop.f32.mrb[13].mxu0  ;;  %344 = vrot.lane.b32.xlu0 %v337_v58, %s561_s8 }
 0x1c8   :  { %v340_v60 = vpop.f32.mrb[14].mxu0 }
 0x1c9   :  { %v518_v61 = vpop.f32.mrb[15].mxu0 }
 0x1de   :  { %v391_v62 = vpop.f32.mrb[4].mxu1 }
 0x1df   :  { %397 = vst.msk [vmem:[%s748_s5 + $0x8] sm:$0xff] %vm293_vm3, %v391_v62  ;;  %v537_v63 = vpop.f32.mrb[5].mxu1 }
 0x1e0   :  { %v394_v0 = vpop.f32.mrb[6].mxu1 }
 0x1e1   :  { %v538_v1 = vpop.f32.mrb[7].mxu1 }
 0x239   :  { %v345_v2 = vpop.permute.xlu0 %344 }
 0x23a   :  { %348 = vst.msk [vmem:[%s748_s5] sm:$0xff] %vm347_vm4, %v345_v2 }

</bundles_post_ra>
